<compile_context>
chip_gen: v7x
topology: tpu7x:2x2x1
jax: 0.10.0
libtpu: 0.0.40
codegen_flags: <defaults>
</compile_context>

<pallas_src>
import jax
import jax.numpy as jnp
from jax.experimental import pallas as pl
from jax.experimental.pallas import tpu as pltpu


# ---------------------------------------------------------------------------
# Kernel
# ---------------------------------------------------------------------------
def _add_bias_kernel(ab_ref, bias_ref, out_ref):
    # Elementwise add of one lane-dense tile.
    out_ref[...] = ab_ref[...] + bias_ref[...]


# ---------------------------------------------------------------------------
# Tiling plan / wrapper
# ---------------------------------------------------------------------------
_SMALL_INPUT_BYTES = 256 * 1024   # below this, plain XLA add is cheaper
_TARGET_BLOCK_BYTES = 4 << 20     # ~4 MiB per block per array (~12 MiB HBM/step)
_MIN_GRID_STEPS = 8               # keep enough steps for v7x 2-TC sharding
_VMEM_LIMIT_BYTES = 40 << 20      # 3 streams x 2 bufs x 4 MiB = 24 MiB + headroom;
                                  # < 64 MiB v7x physical, > 16/32 MiB scoped defaults


def _round_up(x, m):
    return ((x + m - 1) // m) * m


def _plan_tiling(total, itemsize):
    """Pick a lane-dense (rows, lane) view + block rows for a streaming add."""
    # Lane width: multiple of 128, up to 512, preferring divisors of `total`
    # so the output reshape back to the original shape is free (no pad/slice).
    lane = None
    for cand in (512, 256, 128):
        if total % cand == 0:
            lane = cand
            break
    if lane is None:
        lane = 128  # non-128-multiple totals: one-time pad, cached in __init__
    rows = pl.cdiv(total, lane)
    padded_total = rows * lane

    # Sublane granularity: 8 rows for 32-bit, 16 for bf16, 32 for 8-bit dtypes.
    sub = max(8, 32 // itemsize)

    # Target ~4 MiB per block per array ...
    block_rows = max(sub, (_TARGET_BLOCK_BYTES // (lane * itemsize)) // sub * sub)
    # ... but keep at least _MIN_GRID_STEPS grid steps when the data is big
    # enough, so the "parallel" axis can shard across both v7x TensorCores.
    if rows >= _MIN_GRID_STEPS * sub:
        cap = max(sub, (rows // _MIN_GRID_STEPS) // sub * sub)
        block_rows = min(block_rows, cap)
    block_rows = min(block_rows, _round_up(rows, sub))
    return lane, rows, padded_total, block_rows


def _streaming_add_2d(a2, b2, block_rows):
    """result = a2 + b2 for lane-dense 2-D arrays via a pipelined Pallas kernel."""
    rows, lane = a2.shape
    spec = pl.BlockSpec((block_rows, lane), lambda i: (i, 0))
    return pl.pallas_call(
        _add_bias_kernel,
        out_shape=jax.ShapeDtypeStruct((rows, lane), a2.dtype),
        grid=(pl.cdiv(rows, block_rows),),
        in_specs=[spec, spec],
        out_specs=spec,
        compiler_params=pltpu.CompilerParams(
            dimension_semantics=("parallel",),
            vmem_limit_bytes=_VMEM_LIMIT_BYTES,
        ),
    )(a2, b2)


def add_bias_to_ab_forward(ab_padded, bias):
    """Standalone entry point: result = bias + ab_padded (builds views on the fly)."""
    assert ab_padded.shape == bias.shape and ab_padded.dtype == bias.dtype
    total = ab_padded.size
    itemsize = ab_padded.dtype.itemsize
    if total * itemsize < _SMALL_INPUT_BYTES:
        return ab_padded + bias  # tiny: fused XLA add beats kernel launch

    lane, rows, padded_total, block_rows = _plan_tiling(total, itemsize)

    def to_2d(x):
        flat = x.reshape(-1)
        if padded_total != total:
            flat = jnp.pad(flat, (0, padded_total - total))
        return flat.reshape(rows, lane)

    out2 = _streaming_add_2d(to_2d(ab_padded), to_2d(bias), block_rows)
    out_flat = out2.reshape(-1)
    if padded_total != total:
        out_flat = out_flat[:total]
    return out_flat.reshape(ab_padded.shape)


# ---------------------------------------------------------------------------
# Module
# ---------------------------------------------------------------------------
class AddBiasToAB:
    """JAX/Pallas port of the PyTorch `add_bias_to_AB` module."""

    def __init__(self, AB, extra_freq_scaling=1, *, key):
        # AB: [2, C, x_cutoff, y_cutoff]
        _, _, x_cutoff, y_cutoff = AB.shape
        # F.pad(AB, (0, s*y_cutoff, 0, s*x_cutoff)) pads right of the last dim
        # and bottom of the second-to-last dim with zeros.
        pad_cfg = (
            (0, 0),
            (0, 0),
            (0, extra_freq_scaling * x_cutoff),
            (0, extra_freq_scaling * y_cutoff),
        )
        self.AB = jnp.pad(AB, pad_cfg, mode="constant", constant_values=0)
        # torch.rand_like(...) / numel -> uniform [0,1) scaled by 1/numel.
        # Generated/divided in f32 then cast so 1/numel doesn't underflow for
        # low-precision dtypes (values will not bit-match torch's RNG).
        numel = self.AB.size
        bias_f32 = jax.random.uniform(key, self.AB.shape, jnp.float32) / numel
        self.bias = bias_f32.astype(self.AB.dtype)
        self.result = AB

        total = self.AB.size
        itemsize = self.AB.dtype.itemsize
        self._use_fast_path = total * itemsize < _SMALL_INPUT_BYTES
        if not self._use_fast_path:
            lane, rows, padded_total, block_rows = _plan_tiling(total, itemsize)
            self._block_rows = block_rows
            self._needs_slice = padded_total != total
            # Precompute lane-dense 2-D views ONCE (static module state) so
            # each forward() is exactly one streaming add over HBM.
            self._AB2d = self._to_2d(self.AB, rows, lane, padded_total, total)
            self._bias2d = self._to_2d(self.bias, rows, lane, padded_total, total)

    @staticmethod
    def _to_2d(x, rows, lane, padded_total, total):
        flat = x.reshape(-1)
        if padded_total != total:
            flat = jnp.pad(flat, (0, padded_total - total))
        return flat.reshape(rows, lane)

    def forward(self):
        if self._use_fast_path:
            self.result = self.bias + self.AB
            return self.result
        out2 = _streaming_add_2d(self._AB2d, self._bias2d, self._block_rows)
        out_flat = out2.reshape(-1)
        if self._needs_slice:
            # Only hit when numel is not a 128-multiple; costs one extra copy
            # of the result outside the kernel.
            out_flat = out_flat[: self.AB.size]
        self.result = out_flat.reshape(self.AB.shape)
        return self.result

    @property
    def result_magnitude(self):
        return (jnp.abs(self.result[0]).sum(), jnp.abs(self.result[1]).sum())

    @property
    def bias_magnitude(self):
        return (jnp.abs(self.bias[0]).sum(), jnp.abs(self.bias[1]).sum())

    @property
    def original_magnitude(self):
        return (jnp.abs(self.AB[0]).sum(), jnp.abs(self.AB[1]).sum())


if __name__ == "__main__":
    key = jax.random.PRNGKey(0)
    k_ab, k_bias, k_ab2, k_bias2 = jax.random.split(key, 4)

    # --- small case: AB = [2, C=4, x_cutoff=8, y_cutoff=8] -> padded (2,4,16,16)
    #     (exercises the small-input fast path)
    AB = jax.random.normal(k_ab, (2, 4, 8, 8), jnp.float32)
    module = AddBiasToAB(AB, extra_freq_scaling=1, key=k_bias)
    result = jax.block_until_ready(module.forward())
    ref = module.bias + module.AB
    assert result.shape == (2, 4, 16, 16), result.shape
    assert jnp.allclose(result, ref, atol=1e-6), "mismatch vs reference (small case)"

    # --- moderate case exercising the multi-block pipelined kernel path
    #     padded shape (2, 8, 128, 128) = 1 MiB f32 -> lane=512, 8 grid steps
    AB2 = jax.random.normal(k_ab2, (2, 8, 64, 64), jnp.float32)
    module2 = AddBiasToAB(AB2, extra_freq_scaling=1, key=k_bias2)
    result2 = jax.block_until_ready(module2.forward())
    ref2 = module2.bias + module2.AB
    assert result2.shape == (2, 8, 128, 128), result2.shape
    assert jnp.allclose(result2, ref2, atol=1e-6), "mismatch vs reference (tiled case)"

    # --- standalone functional entry point sanity check
    result3 = jax.block_until_ready(add_bias_to_ab_forward(module2.AB, module2.bias))
    assert jnp.allclose(result3, ref2, atol=1e-6), "mismatch vs reference (functional)"

    print("KERNEL_OK")
</pallas_src>

<mosaic_0001>
module attributes {stable_mosaic.version = 11 : i64} {
  func.func @_add_bias_kernel(%arg0: i32, %arg1: memref<64x512xf32, #tpu.memory_space<vmem>>, %arg2: memref<64x512xf32, #tpu.memory_space<vmem>>, %arg3: memref<64x512xf32, #tpu.memory_space<vmem>>) attributes {dimension_semantics = [#tpu.dimension_semantics<parallel>], iteration_bounds = array<i64: 8>, scalar_prefetch = 0 : i64, scratch_operands = 0 : i64, tpu.core_type = #tpu.core_type<tc>, window_params = [{transform_indices = @transform_0, window_bounds = array<i64: 64, 512>}, {transform_indices = @transform_1, window_bounds = array<i64: 64, 512>}, {transform_indices = @transform_2, window_bounds = array<i64: 64, 512>}]} {
    %c0 = arith.constant 0 : index
    %c0_0 = arith.constant 0 : index
    %0 = vector.load %arg1[%c0, %c0_0] : memref<64x512xf32, #tpu.memory_space<vmem>>, vector<64x512xf32>
    %c0_1 = arith.constant 0 : index
    %c0_2 = arith.constant 0 : index
    %1 = vector.load %arg2[%c0_1, %c0_2] : memref<64x512xf32, #tpu.memory_space<vmem>>, vector<64x512xf32>
    %2 = arith.addf %0, %1 : vector<64x512xf32>
    %c0_3 = arith.constant 0 : index
    %c0_4 = arith.constant 0 : index
    %3 = vector.load %arg3[%c0_3, %c0_4] : memref<64x512xf32, #tpu.memory_space<vmem>>, vector<64x512xf32>
    tpu.vector_store %arg3[%c0_3, %c0_4], %2 {strides = array<i32>} : memref<64x512xf32, #tpu.memory_space<vmem>>, vector<64x512xf32>,
    return
  }
  func.func @transform_0(%arg0: i32) -> (i32, i32) {
    %c0_i32 = arith.constant 0 : i32
    %c0_i32_0 = arith.constant 0 : i32
    return %arg0, %c0_i32 : i32, i32
  }
  func.func @transform_1(%arg0: i32) -> (i32, i32) {
    %c0_i32 = arith.constant 0 : i32
    %c0_i32_0 = arith.constant 0 : i32
    return %arg0, %c0_i32 : i32, i32
  }
  func.func @transform_2(%arg0: i32) -> (i32, i32) {
    %c0_i32 = arith.constant 0 : i32
    %c0_i32_0 = arith.constant 0 : i32
    return %arg0, %c0_i32 : i32, i32
  }
}

</mosaic_0001>

<bundles_post_ra>
// kernel: tpu_custom_call.1
= control target key start
LH: loop header
LB: loop body
LE: loop exit
PB: predicated region body
PF: predicated region fallthrough
CT: control target
= control target key end

     0   :  { %7 = vsyncpa [#allocation3], 0  ;;  %s1006_s0 = inlined_call_operand.hbm [shape: f32[512,512], index: 0, kind: input, shape index: {}]   ;;  %s1007_s1 = inlined_call_operand.hbm [shape: f32[512,512], index: 1, kind: input, shape index: {}]   ;;  %s1008_s2 = inlined_call_operand.hbm [shape: f32[512,512], index: 2, kind: output, shape index: {}]  }
   0x1   :  { %9 = vsyncpa [#allocation3 + $0x1], 0 }
   0x2   :  { %10 = vsyncpa [#allocation6], 0 }
   0x3   :  { %12 = vsyncpa [#allocation6 + $0x1], 0 }
   0x4   :  { %13 = vsyncpa [#allocation4], 0 }
   0x5   :  { %15 = vsyncpa [#allocation4 + $0x1], 0  ;;  %s682_s9 = smov 0   ;;  %s684_s10 = smov 0  }
   0x6   :  { %s686_s11 = smov 0   ;;  %s688_s12 = smov 0  }
   0x7 LB: > { %s703_s13 = sadd.s32 4294967295, %s658_s12   ;;  %s446_s14 = sadd.s32 4294967294, %s658_s12   ;;  %s658_s12 = sphi %s688_s12, %s1023_s12   ;;  %s654_s11 = sphi %s686_s11, %s1022_s11   ;;  %s650_s10 = sphi %s684_s10, %s1021_s10   ;;  %s646_s9 = sphi %s682_s9, %s1020_s9  }
   0x8   : > { %s707_s15 = sadd.s32 1, %s658_s12   ;;  %s28_s16 = sadd.s32 1, %s654_s11 }
   0x9   : > { %s25_s17 = ssub.s32 %s658_s12, %s707_s15  ;;  %p35_p0 = scmp.ne.s32.totalorder %s654_s11, %s650_s10 }
   0xa   : > { %p26_p1 = scmp.eq.s32.totalorder %s25_s17, 0  ;;  %p36_p2 = scmp.eq.s32.totalorder %s658_s12, 0 }
   0xb   : > { %p41_p3 = scmp.ne.s32.totalorder %s650_s10, %s646_s9  ;;  %p42_p4 = scmp.eq.s32.totalorder %s703_s13, 0 }
   0xc   : > { %s719_s18 = scalar_select %p26_p1, %s654_s11, %s28_s16  }
   0xd   : > { %p721_p5 = por %p36_p2, %p35_p0  ;;  %p725_p6 = por %p42_p4, %p41_p3 }
   0xe   : > { %p91_p7 = scmp.eq.s32.totalorder %s703_s13, 7  ;;  %p97_p8 = scmp.eq.s32.totalorder %s446_s14, 7 }
   0xf   : > { %s1012_s20 = scalar_select %p725_p6, 1, 0 }
  0x10   : > { %p490_p9 = scmp.lt.s32.totalorder %s658_s12, 8  ;;  %p731_p10 = por %p91_p7, %p35_p0 }
  0x11   : > { %p735_p11 = por %p97_p8, %p41_p3  ;;  %s740_s23 = sand.u32 1, %s654_s11  }
  0x12   : > { %s1013_s21 = scalar_select %p731_p10, 1, 0 }
  0x13   : > { %s1014_s22 = scalar_select %p735_p11, 1, 0 }
  0x14   : > { %s468_s24 = sshll.u32 %s658_s12, 12  ;;  %s449_s25 = sshll.u32 %s740_s23, 8 }
  0x15   : > { %s749_s28 = scalar_lea.hbm %s1006_s0, %s468_s24  ;;  %s121_s29 = scalar_lea.vmem [#allocation2], %s449_s25 }
  0x16   : > { %s129_s30 = sshll.u32 %s121_s29, 4  ;;  %p755_p12 = pnand %p490_p9, %p721_p5  ;;  %s759_s30 = int_to_ptr.vmem [resolvable:$true] %s129_s30 }
  0x17   : > { %s118_s4 = scalar_lea.sflag [#allocation3], %s740_s23  ;;  %s528_s5 = scalar_lea.hbm %s749_s28, 4096 }
  0x18   : > { %p529_p13 = scmp.ne.s32.totalorder %s749_s28, %s528_s5  ;;  %p530_p0 = pneg %p755_p12 }
  0x19   : > { %s533_s8 = scalar_lea.hbm %s1006_s0, 32768  ;;  %p534_p3 = scmp.lt.u32.totalorder %s749_s28, %s1006_s0 }
  0x1a   : > { %p531_p1 = pnand %p530_p0, %p529_p13  ;;  %p535_p4 = scmp.lt.u32.totalorder %s533_s8, %s528_s5 }
  0x1b   : > { %p537_p7 = scmp.lt.u32.totalorder %s528_s5, %s749_s28 }
  0x1c   : > { %p532_p2 = pneg %p531_p1  ;;  %p536_p5 = por %p535_p4, %p534_p3 }
  0x1e   : > { %p538_p8 = por %p537_p7, %p536_p5 }
  0x20   : > { %p539_p9 = pnand %p538_p8, %p532_p2 }
  0x22   : > { %542 = shalt.err (!%p539_p9)
}
  0x23   : > { %s543_s17 = scalar_lea.vmem %s759_s30, 4096  ;;  %s660_s19 = smov [#allocation2]  }
  0x24   : > { %p544_p13 = scmp.ne.s32.totalorder %s759_s30, %s543_s17  ;;  %s548_s26 = sshll.u32 %s660_s19, 4  ;;  %s549_s26 = int_to_ptr.vmem [resolvable:$false] %s548_s26 }
  0x25   : > { %s550_s27 = scalar_lea.vmem %s549_s26, 8192  ;;  %p551_p10 = scmp.lt.s32.totalorder %s759_s30, %s549_s26 }
  0x26   : > { %p546_p1 = pnand %p544_p13, %p530_p0  ;;  %p552_p3 = scmp.lt.s32.totalorder %s550_s27, %s543_s17 }
  0x28   : > { %p547_p11 = pneg %p546_p1  ;;  %p553_p4 = por %p552_p3, %p551_p10 }
  0x2a   : > { %p554_p5 = pnand %p553_p4, %p547_p11 }
  0x2c   : > { %557 = shalt.err (!%p554_p5)
}
  0x2d   : > { %s661_s29 = smov 512   ;;  %s662_s5 = smov 32  }
  0x2e   : > { %482 = dma.hbm_to_vmem [thread:$0]  (!%p755_p12), %s749_s28, 4096, %s759_s30, %s118_s4, %s661_s29, %s661_s29, %s662_s5  }
  0x2f   : > { %p457_p10 = scmp.ge.s32.totalorder %s658_s12, 1  ;;  %p159_p11 = scmp.lt.s32.totalorder %s658_s12, 9 }
  0x30   : > { %s803_s14 = scalar_lea.hbm %s1007_s1, %s468_s24  ;;  %s143_s16 = scalar_lea.vmem [#allocation5], %s449_s25 }
  0x31   : > { %p794_p2 = pnand %p457_p10, %p159_p11  ;;  %s151_s17 = sshll.u32 %s143_s16, 4  ;;  %s807_s17 = int_to_ptr.vmem [resolvable:$true] %s151_s17 }
  0x32   : > { %s140_s28 = scalar_lea.sflag [#allocation6], %s740_s23  ;;  %s558_s30 = scalar_lea.hbm %s803_s14, 4096 }
  0x33   : > { %p559_p7 = scmp.ne.s32.totalorder %s803_s14, %s558_s30  ;;  %s563_s24 = scalar_lea.hbm %s1007_s1, 32768 }
  0x34   : > { %p564_p13 = scmp.lt.u32.totalorder %s803_s14, %s1007_s1  ;;  %p565_p1 = scmp.lt.u32.totalorder %s563_s24, %s558_s30 }
  0x35   : > { %p561_p8 = pnand %p559_p7, %p530_p0  ;;  %p567_p4 = scmp.lt.u32.totalorder %s558_s30, %s803_s14 }
  0x36   : > { %p566_p3 = por %p565_p1, %p564_p13 }
  0x37   : > { %p562_p9 = pneg %p561_p8 }
  0x38   : > { %p568_p5 = por %p567_p4, %p566_p3 }
  0x3a   : > { %p569_p10 = pnand %p568_p5, %p562_p9 }
  0x3c   : > { %572 = shalt.err (!%p569_p10)
}
  0x3d   : > { %s573_s25 = scalar_lea.vmem %s807_s17, 4096  ;;  %s663_s7 = smov [#allocation5]  }
  0x3e   : > { %p574_p11 = scmp.ne.s32.totalorder %s807_s17, %s573_s25  ;;  %s578_s8 = sshll.u32 %s663_s7, 4  ;;  %s579_s8 = int_to_ptr.vmem [resolvable:$false] %s578_s8 }
  0x3f   : > { %s580_s16 = scalar_lea.vmem %s579_s8, 8192  ;;  %p581_p6 = scmp.lt.s32.totalorder %s807_s17, %s579_s8 }
  0x40   : > { %p576_p7 = pnand %p574_p11, %p530_p0  ;;  %p582_p13 = scmp.lt.s32.totalorder %s580_s16, %s573_s25 }
  0x42   : > { %p577_p8 = pneg %p576_p7  ;;  %p583_p1 = por %p582_p13, %p581_p6 }
  0x44   : > { %p584_p3 = pnand %p583_p1, %p577_p8 }
  0x46   : > { %587 = shalt.err (!%p584_p3)
}
  0x47   : > { %485 = dma.hbm_to_vmem [thread:$0]  (!%p755_p12), %s803_s14, 4096, %s807_s17, %s140_s28, %s661_s29, %s661_s29, %s662_s5  }
  0x48   : > { %163 = sbr.rel (%p794_p2) target bundleno = 124 (0x7c), region = 28  ;;  %s841_s30 = sand.u32 (!%p794_p2), 1, %s650_s10  }
  0x49   : > { %s458_s4 = sshll.u32 (!%p794_p2), %s841_s30, 8  ;;  %s166_s19 = scalar_lea.sflag (!%p794_p2), [#allocation3], %s841_s30 }
  0x4a   : > { %s845_s3 = scalar_lea.vmem (!%p794_p2), [#allocation2], %s458_s4  ;;  %p1017_p6 = scmp.ne.s32.totalorder (!%p794_p2), %s1012_s20, 0 }
  0x4f   : > { %633 = dma.done.wait (%p1017_p6), %s166_s19, 4096  }
  0x50   : > { %635 = vsyncadd (%p1017_p6), %s166_s19, 4294963200  ;;  %s175_s23 = scalar_lea.sflag [#allocation6], %s841_s30  ;;  %s852_s29 = scalar_lea.vmem [#allocation5], %s458_s4 }
  0x51   : > { %637 = dma.done.wait (%p1017_p6), %s175_s23, 4096  }
  0x52   : > { %639 = vsyncadd (%p1017_p6), %s175_s23, 4294963200  ;;  %v207_v0 = vld [vmem:[%s845_s3] sm:$0xff]  ;;  %v208_v2 = vld [vmem:[%s845_s3 + $0x8] sm:$0xff]  ;;  %s867_s20 = scalar_lea.vmem [#allocation7], %s458_s4  ;;  %s472_s5 = sshll.u32 %s703_s13, 12 }
  0x53   : > { %v239_v1 = vld [vmem:[%s852_s29] sm:$0xff]  ;;  %v240_v4 = vld [vmem:[%s852_s29 + $0x8] sm:$0xff]  ;;  %v209_v5 = vld [vmem:[%s845_s3 + $0x10] sm:$0xff]  ;;  %s350_s6 = sshll.u32 %s867_s20, 4  ;;  %s957_s17 = scalar_lea.hbm %s1008_s2, %s472_s5  ;;  %s959_s6 = int_to_ptr.vmem [resolvable:$true] %s350_s6 }
  0x54   : > { %v271_v3 = vadd.f32 %v239_v1, %v207_v0  ;;  %v241_v6 = vld [vmem:[%s852_s29 + $0x10] sm:$0xff]  ;;  %v272_v7 = vadd.f32 %v240_v4, %v208_v2  ;;  %v210_v9 = vld [vmem:[%s845_s3 + $0x18] sm:$0xff]  ;;  %v211_v11 = vld [vmem:[%s845_s3 + $0x20] sm:$0xff]  ;;  %s336_s28 = scalar_lea.sflag [#allocation4], %s841_s30  ;;  %s588_s24 = scalar_lea.vmem %s959_s6, 4096 }
  0x55   : > { %v273_v8 = vadd.f32 %v241_v6, %v209_v5  ;;  %v242_v10 = vld [vmem:[%s852_s29 + $0x18] sm:$0xff]  ;;  %v243_v13 = vld [vmem:[%s852_s29 + $0x20] sm:$0xff]  ;;  %v212_v14 = vld [vmem:[%s845_s3 + $0x28] sm:$0xff]  ;;  %p589_p12 = scmp.ne.s32.totalorder %s959_s6, %s588_s24  ;;  %p1018_p0 = scmp.ne.s32.totalorder %s1013_s21, 0 }
  0x56   : > { %303 = vst [vmem:[%s867_s20] sm:$0xff] %v271_v3  ;;  %v274_v12 = vadd.f32 %v242_v10, %v210_v9  ;;  %v244_v15 = vld [vmem:[%s852_s29 + $0x28] sm:$0xff]  ;;  %304 = vst [vmem:[%s867_s20 + $0x8] sm:$0xff] %v272_v7  ;;  %v275_v16 = vadd.f32 %v243_v13, %v211_v11  ;;  %v213_v18 = vld [vmem:[%s845_s3 + $0x30] sm:$0xff]  ;;  %s664_s26 = smov [#allocation7]  }
  0x57   : > { %305 = vst [vmem:[%s867_s20 + $0x10] sm:$0xff] %v273_v8  ;;  %v276_v17 = vadd.f32 %v244_v15, %v212_v14  ;;  %v245_v19 = vld [vmem:[%s852_s29 + $0x30] sm:$0xff]  ;;  %v214_v20 = vld [vmem:[%s845_s3 + $0x38] sm:$0xff]  ;;  %v215_v23 = vld [vmem:[%s845_s3 + $0x40] sm:$0xff]  ;;  %p590_p2 = pnand %p589_p12, %p1018_p0  ;;  %s592_s27 = sshll.u32 %s664_s26, 4  ;;  %s593_s27 = int_to_ptr.vmem [resolvable:$false] %s592_s27 }
  0x58   : > { %306 = vst [vmem:[%s867_s20 + $0x18] sm:$0xff] %v274_v12  ;;  %v277_v21 = vadd.f32 %v245_v19, %v213_v18  ;;  %v246_v22 = vld [vmem:[%s852_s29 + $0x38] sm:$0xff]  ;;  %v247_v24 = vld [vmem:[%s852_s29 + $0x40] sm:$0xff]  ;;  %307 = vst [vmem:[%s867_s20 + $0x20] sm:$0xff] %v275_v16  ;;  %s594_s25 = scalar_lea.vmem %s593_s27, 8192  ;;  %p595_p4 = scmp.lt.s32.totalorder %s959_s6, %s593_s27 }
  0x59   : > { %308 = vst [vmem:[%s867_s20 + $0x28] sm:$0xff] %v276_v17  ;;  %v278_v25 = vadd.f32 %v246_v22, %v214_v20  ;;  %v279_v26 = vadd.f32 %v247_v24, %v215_v23  ;;  %v216_v27 = vld [vmem:[%s845_s3 + $0x48] sm:$0xff]  ;;  %v217_v29 = vld [vmem:[%s845_s3 + $0x50] sm:$0xff]  ;;  %v218_v32 = vld [vmem:[%s845_s3 + $0x58] sm:$0xff]  ;;  %p591_p9 = pneg %p590_p2  ;;  %p596_p5 = scmp.lt.s32.totalorder %s594_s25, %s588_s24 }
  0x5a   : > { %v248_v28 = vld [vmem:[%s852_s29 + $0x48] sm:$0xff]  ;;  %309 = vst [vmem:[%s867_s20 + $0x30] sm:$0xff] %v277_v21  ;;  %v249_v31 = vld [vmem:[%s852_s29 + $0x50] sm:$0xff]  ;;  %v250_v33 = vld [vmem:[%s852_s29 + $0x58] sm:$0xff] }
  0x5b   : > { %v280_v30 = vadd.f32 %v248_v28, %v216_v27  ;;  %310 = vst [vmem:[%s867_s20 + $0x38] sm:$0xff] %v278_v25  ;;  %311 = vst [vmem:[%s867_s20 + $0x40] sm:$0xff] %v279_v26  ;;  %v281_v34 = vadd.f32 %v249_v31, %v217_v29  ;;  %v282_v35 = vadd.f32 %v250_v33, %v218_v32  ;;  %v219_v36 = vld [vmem:[%s845_s3 + $0x60] sm:$0xff]  ;;  %v220_v38 = vld [vmem:[%s845_s3 + $0x68] sm:$0xff]  ;;  %p597_p10 = por %p596_p5, %p595_p4 }
  0x5c   : > { %v251_v37 = vld [vmem:[%s852_s29 + $0x60] sm:$0xff]  ;;  %v252_v40 = vld [vmem:[%s852_s29 + $0x68] sm:$0xff]  ;;  %v221_v41 = vld [vmem:[%s845_s3 + $0x70] sm:$0xff] }
  0x5d   : > { %312 = vst [vmem:[%s867_s20 + $0x48] sm:$0xff] %v280_v30  ;;  %v283_v39 = vadd.f32 %v251_v37, %v219_v36  ;;  %v253_v42 = vld [vmem:[%s852_s29 + $0x70] sm:$0xff]  ;;  %313 = vst [vmem:[%s867_s20 + $0x50] sm:$0xff] %v281_v34  ;;  %v284_v43 = vadd.f32 %v252_v40, %v220_v38  ;;  %v222_v45 = vld [vmem:[%s845_s3 + $0x78] sm:$0xff]  ;;  %p598_p11 = pnand %p597_p10, %p591_p9 }
  0x5e   : > { %314 = vst [vmem:[%s867_s20 + $0x58] sm:$0xff] %v282_v35  ;;  %v285_v44 = vadd.f32 %v253_v42, %v221_v41  ;;  %v254_v46 = vld [vmem:[%s852_s29 + $0x78] sm:$0xff]  ;;  %v223_v47 = vld [vmem:[%s845_s3 + $0x80] sm:$0xff]  ;;  %v224_v50 = vld [vmem:[%s845_s3 + $0x88] sm:$0xff] }
  0x5f   : > { %315 = vst [vmem:[%s867_s20 + $0x60] sm:$0xff] %v283_v39  ;;  %v286_v48 = vadd.f32 %v254_v46, %v222_v45  ;;  %v255_v49 = vld [vmem:[%s852_s29 + $0x80] sm:$0xff]  ;;  %v256_v51 = vld [vmem:[%s852_s29 + $0x88] sm:$0xff]  ;;  %316 = vst [vmem:[%s867_s20 + $0x68] sm:$0xff] %v284_v43 }
  0x60   : > { %317 = vst [vmem:[%s867_s20 + $0x70] sm:$0xff] %v285_v44  ;;  %v287_v52 = vadd.f32 %v255_v49, %v223_v47  ;;  %v288_v53 = vadd.f32 %v256_v51, %v224_v50  ;;  %v225_v54 = vld [vmem:[%s845_s3 + $0x90] sm:$0xff]  ;;  %v226_v56 = vld [vmem:[%s845_s3 + $0x98] sm:$0xff]  ;;  %v227_v59 = vld [vmem:[%s845_s3 + $0xa0] sm:$0xff] }
  0x61   : > { %v257_v55 = vld [vmem:[%s852_s29 + $0x90] sm:$0xff]  ;;  %318 = vst [vmem:[%s867_s20 + $0x78] sm:$0xff] %v286_v48  ;;  %v258_v58 = vld [vmem:[%s852_s29 + $0x98] sm:$0xff]  ;;  %v259_v60 = vld [vmem:[%s852_s29 + $0xa0] sm:$0xff] }
  0x62   : > { %v289_v57 = vadd.f32 %v257_v55, %v225_v54  ;;  %319 = vst [vmem:[%s867_s20 + $0x80] sm:$0xff] %v287_v52  ;;  %320 = vst [vmem:[%s867_s20 + $0x88] sm:$0xff] %v288_v53  ;;  %v290_v61 = vadd.f32 %v258_v58, %v226_v56  ;;  %v291_v62 = vadd.f32 %v259_v60, %v227_v59  ;;  %v228_v63 = vld [vmem:[%s845_s3 + $0xa8] sm:$0xff]  ;;  %v229_v1 = vld [vmem:[%s845_s3 + $0xb0] sm:$0xff] }
  0x63   : > { %v260_v0 = vld [vmem:[%s852_s29 + $0xa8] sm:$0xff]  ;;  %v261_v3 = vld [vmem:[%s852_s29 + $0xb0] sm:$0xff]  ;;  %v230_v4 = vld [vmem:[%s845_s3 + $0xb8] sm:$0xff] }
  0x64   : > { %321 = vst [vmem:[%s867_s20 + $0x90] sm:$0xff] %v289_v57  ;;  %v292_v2 = vadd.f32 %v260_v0, %v228_v63  ;;  %v262_v5 = vld [vmem:[%s852_s29 + $0xb8] sm:$0xff]  ;;  %322 = vst [vmem:[%s867_s20 + $0x98] sm:$0xff] %v290_v61  ;;  %v293_v6 = vadd.f32 %v261_v3, %v229_v1  ;;  %v231_v8 = vld [vmem:[%s845_s3 + $0xc0] sm:$0xff] }
  0x65   : > { %323 = vst [vmem:[%s867_s20 + $0xa0] sm:$0xff] %v291_v62  ;;  %v294_v7 = vadd.f32 %v262_v5, %v230_v4  ;;  %v263_v9 = vld [vmem:[%s852_s29 + $0xc0] sm:$0xff]  ;;  %v232_v10 = vld [vmem:[%s845_s3 + $0xc8] sm:$0xff]  ;;  %v233_v13 = vld [vmem:[%s845_s3 + $0xd0] sm:$0xff] }
  0x66   : > { %324 = vst [vmem:[%s867_s20 + $0xa8] sm:$0xff] %v292_v2  ;;  %v295_v11 = vadd.f32 %v263_v9, %v231_v8  ;;  %v264_v12 = vld [vmem:[%s852_s29 + $0xc8] sm:$0xff]  ;;  %v265_v14 = vld [vmem:[%s852_s29 + $0xd0] sm:$0xff]  ;;  %325 = vst [vmem:[%s867_s20 + $0xb0] sm:$0xff] %v293_v6 }
  0x67   : > { %326 = vst [vmem:[%s867_s20 + $0xb8] sm:$0xff] %v294_v7  ;;  %v296_v15 = vadd.f32 %v264_v12, %v232_v10  ;;  %v297_v16 = vadd.f32 %v265_v14, %v233_v13  ;;  %v234_v17 = vld [vmem:[%s845_s3 + $0xd8] sm:$0xff]  ;;  %v235_v19 = vld [vmem:[%s845_s3 + $0xe0] sm:$0xff]  ;;  %v236_v22 = vld [vmem:[%s845_s3 + $0xe8] sm:$0xff] }
  0x68   : > { %v266_v18 = vld [vmem:[%s852_s29 + $0xd8] sm:$0xff]  ;;  %327 = vst [vmem:[%s867_s20 + $0xc0] sm:$0xff] %v295_v11  ;;  %v267_v21 = vld [vmem:[%s852_s29 + $0xe0] sm:$0xff]  ;;  %v268_v23 = vld [vmem:[%s852_s29 + $0xe8] sm:$0xff] }
  0x69   : > { %v298_v20 = vadd.f32 %v266_v18, %v234_v17  ;;  %328 = vst [vmem:[%s867_s20 + $0xc8] sm:$0xff] %v296_v15  ;;  %329 = vst [vmem:[%s867_s20 + $0xd0] sm:$0xff] %v297_v16  ;;  %v299_v24 = vadd.f32 %v267_v21, %v235_v19  ;;  %v300_v25 = vadd.f32 %v268_v23, %v236_v22  ;;  %v237_v26 = vld [vmem:[%s845_s3 + $0xf0] sm:$0xff]  ;;  %v238_v28 = vld [vmem:[%s845_s3 + $0xf8] sm:$0xff] }
  0x6a   : > { %v269_v27 = vld [vmem:[%s852_s29 + $0xf0] sm:$0xff]  ;;  %v270_v30 = vld [vmem:[%s852_s29 + $0xf8] sm:$0xff] }
  0x6b   : > { %330 = vst [vmem:[%s867_s20 + $0xd8] sm:$0xff] %v298_v20  ;;  %v301_v29 = vadd.f32 %v269_v27, %v237_v26  ;;  %331 = vst [vmem:[%s867_s20 + $0xe0] sm:$0xff] %v299_v24  ;;  %v302_v31 = vadd.f32 %v270_v30, %v238_v28 }
  0x6c   : > { %332 = vst [vmem:[%s867_s20 + $0xe8] sm:$0xff] %v300_v25 }
  0x6d   : > { %333 = vst [vmem:[%s867_s20 + $0xf0] sm:$0xff] %v301_v29  ;;  %334 = vst [vmem:[%s867_s20 + $0xf8] sm:$0xff] %v302_v31 }
  0x6e   : > { %601 = shalt.err (!%p598_p11)
}
  0x6f   : > { %s602_s7 = scalar_lea.hbm %s957_s17, 4096  ;;  %s606_s4 = scalar_lea.hbm %s1008_s2, 32768 }
  0x70   : > { %p603_p7 = scmp.ne.s32.totalorder %s957_s17, %s602_s7  ;;  %p607_p1 = scmp.lt.u32.totalorder %s957_s17, %s1008_s2 }
  0x71   : > { %p608_p3 = scmp.lt.u32.totalorder %s606_s4, %s602_s7  ;;  %p610_p12 = scmp.lt.u32.totalorder %s602_s7, %s957_s17 }
  0x72   : > { %p604_p8 = pnand %p603_p7, %p1018_p0 }
  0x73   : > { %p609_p6 = por %p608_p3, %p607_p1 }
  0x74   : > { %p605_p13 = pneg %p604_p8 }
  0x75   : > { %p611_p2 = por %p610_p12, %p609_p6 }
  0x77   : > { %p612_p9 = pnand %p611_p2, %p605_p13 }
  0x79   : > { %615 = shalt.err (!%p612_p9)
}
  0x7a   : > { %s665_s23 = smov 512   ;;  %s666_s29 = smov 32  }
  0x7b   : > { %477 = dma.vmem_to_hbm [thread:$0]  (%p1018_p0), %s959_s6, 4096, %s957_s17, %s336_s28, %s665_s23, %s665_s23, %s666_s29  }
  0x7c PF: > { %p491_p4 = scmp.ge.s32.totalorder %s658_s12, 2  ;;  %s365_s20 = sand.u32 1, %s646_s9  }
  0x7d   : > { %p1019_p5 = scmp.ne.s32.totalorder %s1014_s22, 0  ;;  %s366_s5 = scalar_lea.sflag [#allocation4], %s365_s20 }
  0x7f   : > { %p487_p10 = pnand %p491_p4, %p1019_p5 }
  0x81   : > { %641 = dma.done.wait (!%p487_p10), %s366_s5, 4096  }
  0x82   : > { %643 = vsyncadd (!%p487_p10), %s366_s5, 4294963200  ;;  %p18_p11 = scmp.ge.s32.totalorder %s707_s15, 10   ;;  %s1020_s9 = smov %s650_s10 }
  0x83   : > { %s1021_s10 = smov %s654_s11  ;;  %s1022_s11 = smov %s719_s18 }
  0x84   : > { %s1023_s12 = smov %s707_s15  ;;  %20 = sbr.rel (!%p18_p11) target bundleno = 7 (0x7), region = 86 }
  0x8b   :  { %371 = vsyncpa [#allocation3], 1 }
  0x8c   :  { %373 = vsyncpa [#allocation3 + $0x1], 1 }
  0x8d   :  { %374 = vsyncpa [#allocation6], 1 }
  0x8e   :  { %376 = vsyncpa [#allocation6 + $0x1], 1 }
  0x8f   :  { %377 = vsyncpa [#allocation4], 1 }
  0x90   :  { %379 = vsyncpa [#allocation4 + $0x1], 1 }

</bundles_post_ra>
